<compile_context>
chip_gen: v7x
topology: tpu7x:2x2x1
jax: 0.10.0
libtpu: 0.0.40
codegen_flags: <defaults>
</compile_context>

<pallas_src>
import math

import jax
import jax.numpy as jnp
from jax.experimental import pallas as pl
from jax.experimental.pallas import tpu as pltpu


def _cdiv(a: int, b: int) -> int:
    return -(-a // b)


def _round_up(a: int, b: int) -> int:
    return _cdiv(a, b) * b


def _obs_norm_kernel(x_ref, loc_ref, iscale_ref, o_ref):
    # x_ref/o_ref: (TR, TW); loc_ref/iscale_ref: (1, TW) f32, broadcast over rows.
    x = x_ref[...].astype(jnp.float32)
    o_ref[...] = ((x - loc_ref[...]) * iscale_ref[...]).astype(o_ref.dtype)


def _default_budgets():
    """(block_bytes, vmem_limit_bytes) tuned per TPU generation."""
    vmem_phys = 128 * 1024 * 1024
    try:
        vmem_phys = int(pltpu.get_tpu_info().vmem_capacity_bytes)
    except Exception:
        pass
    if vmem_phys <= 64 * 1024 * 1024:
        # v7x-class: 64 MiB physical VMEM, ~3.2 TB/s HBM -> bigger blocks to
        # amortize the ~0.35 us per-grid-step overhead.  4 double-buffered
        # (in+out) blocks of 6 MiB ~= 24 MiB, well under the 44 MiB limit.
        return 6 * 1024 * 1024, 44 * 1024 * 1024
    # v5e / v6e: 128 MiB physical VMEM; 4 MiB blocks are already ~roofline.
    return 4 * 1024 * 1024, 48 * 1024 * 1024


def observation_norm(x: jax.Array,
                     loc: jax.Array,
                     inv_scale: jax.Array,
                     *,
                     block_bytes: int | None = None,
                     vmem_limit_bytes: int | None = None,
                     min_pallas_elems: int = 262144) -> jax.Array:
    """(x - loc) * inv_scale with loc/inv_scale broadcast over leading axes.

    x: (..., D); loc, inv_scale: broadcastable to (D,).
    """
    orig_shape = x.shape
    D = int(orig_shape[-1])
    x2 = x.reshape(-1, D)
    B = int(x2.shape[0])

    out_dtype = x.dtype if jnp.issubdtype(x.dtype, jnp.floating) else jnp.float32
    # TODO(synk): integer/bool observations are promoted to float32 here; torch.div
    # type promotion for exotic integer dtypes is not reproduced bit-for-bit.
    if not jnp.issubdtype(x2.dtype, jnp.floating):
        x2 = x2.astype(jnp.float32)

    loc_f = jnp.broadcast_to(jnp.reshape(loc, (-1,)).astype(jnp.float32), (D,))
    isc_f = jnp.broadcast_to(jnp.reshape(inv_scale, (-1,)).astype(jnp.float32), (D,))

    def _xla(xs):
        return ((xs.astype(jnp.float32) - loc_f) * isc_f).astype(out_dtype)

    # Small inputs: fused XLA elementwise already hits the HBM roofline;
    # pallas_call launch + pipeline priming would dominate.
    if B * D < min_pallas_elems:
        return _xla(x2).reshape(orig_shape)

    if block_bytes is None or vmem_limit_bytes is None:
        bb, vl = _default_budgets()
        block_bytes = block_bytes if block_bytes is not None else bb
        vmem_limit_bytes = vmem_limit_bytes if vmem_limit_bytes is not None else vl

    itemsize = jnp.dtype(out_dtype).itemsize
    sub = {1: 32, 2: 16, 4: 8}.get(itemsize, 8)   # sublane multiple per dtype

    # ---- Lane-dense folding: view (B_main, D) as (R, W) with W % 128 == 0. ----
    k = 128 // math.gcd(D, 128)                   # rows folded per lane row
    W = k * D
    B_main = (B // k) * k
    if B_main == 0:
        return _xla(x2).reshape(orig_shape)

    x_main = x2 if B_main == B else x2[:B_main]
    R = B_main // k
    xw = x_main.reshape(R, W)                     # contiguous reshape: no copy

    loc_w = jnp.tile(loc_f, (k,)).reshape(1, W)
    isc_w = jnp.tile(isc_f, (k,)).reshape(1, W)

    # ---- Feature tile: split W only if a minimal-height block blows the budget.
    max_w = max(128, (block_bytes // (sub * itemsize)) // 128 * 128)
    tw = W if W <= max_w else max_w
    nwt = _cdiv(W, tw)                            # ragged last W block -> masked

    # ---- Row tile: as many rows as fit the byte budget (multiple of sublane).
    rows_budget = max(sub, (block_bytes // (tw * itemsize)) // sub * sub)
    tr = min(rows_budget, _round_up(R, sub))
    # Megacore (v7x: 2 TCs): keep >= 2 row tiles when there is enough work.
    if tr >= R and R > 2 * sub:
        tr = _round_up(_cdiv(R, 2), sub)
    if tr > R:
        tr = R                                    # single full-extent block
    nrt = _cdiv(R, tr)                            # ragged last row block -> masked

    n_elems = R * W
    cost = pl.CostEstimate(
        flops=2 * n_elems,
        transcendentals=0,
        bytes_accessed=2 * n_elems * itemsize + 2 * W * 4,
    )

    # Grid: W-tile axis OUTER so loc/iscale block indices are constant across
    # the inner (row) loop and are not re-DMA'd every step.
    out_w = pl.pallas_call(
        _obs_norm_kernel,
        out_shape=jax.ShapeDtypeStruct((R, W), out_dtype),
        grid_spec=pltpu.PrefetchScalarGridSpec(
            num_scalar_prefetch=0,
            grid=(nwt, nrt),
            in_specs=[
                pl.BlockSpec((tr, tw), lambda j, i: (i, j)),   # x tile
                pl.BlockSpec((1, tw), lambda j, i: (0, j)),    # loc (resident f32)
                pl.BlockSpec((1, tw), lambda j, i: (0, j)),    # 1/scale (resident f32)
            ],
            out_specs=pl.BlockSpec((tr, tw), lambda j, i: (i, j)),
        ),
        compiler_params=pltpu.CompilerParams(
            dimension_semantics=("parallel", "parallel"),
            vmem_limit_bytes=vmem_limit_bytes),
        cost_estimate=cost,
    )(xw, loc_w, isc_w)

    out_main = out_w.reshape(B_main, D)
    if B_main == B:
        out2 = out_main
    else:
        # < k tail rows: tiny fused XLA epilogue instead of padding the tensor.
        out2 = jnp.concatenate([out_main, _xla(x2[B_main:])], axis=0)
    return out2.reshape(orig_shape)


class ObservationNormJax:
    """JAX/Pallas equivalent of _ObservationNorm's forward pass."""

    def __init__(self, in_keys, out_keys, loc, scale):
        self.in_keys = list(in_keys)
        self.out_keys = list(out_keys)
        # Buffers kept in f32; reciprocal precomputed once (O(D)).
        self.loc = jnp.asarray(loc, jnp.float32).reshape(-1)
        self.inv_scale = 1.0 / jnp.asarray(scale, jnp.float32).reshape(-1)

    def __call__(self, td: dict) -> dict:
        # TODO(synk): dict/key iteration (torch's try/except KeyError) stays host-side.
        for in_key, out_key in zip(self.in_keys, self.out_keys):
            if in_key not in td:
                continue
            td[out_key] = observation_norm(td[in_key], self.loc, self.inv_scale)
        return td


if __name__ == "__main__":
    key = jax.random.PRNGKey(0)
    k_x, k_loc, k_scale, k_x2, k_x3, k_x4 = jax.random.split(key, 6)

    # Case 1: small obs batch, D not a multiple of 128 (lane-dense row folding,
    # fold factor k=8, B divisible by k).  min_pallas_elems=0 forces Pallas.
    B, D = 64, 48
    x = jax.random.normal(k_x, (B, D), dtype=jnp.float32)
    loc = jax.random.normal(k_loc, (D,), dtype=jnp.float32)
    scale = jax.random.uniform(k_scale, (D,), dtype=jnp.float32,
                               minval=0.5, maxval=2.0)
    inv_scale = 1.0 / scale

    out = jax.block_until_ready(
        observation_norm(x, loc, inv_scale, min_pallas_elems=0))
    ref = (x - loc[None, :]) / scale[None, :]
    assert out.shape == x.shape and out.dtype == x.dtype
    assert jnp.allclose(out, ref, atol=1e-5, rtol=1e-5)

    # Case 2: module-level API, including a missing key (mirrors try/except).
    module = ObservationNormJax(
        in_keys=["observation", "absent"],
        out_keys=["observation_norm", "absent_norm"],
        loc=loc, scale=scale)
    td = {"observation": x}
    td = module(td)
    out2 = jax.block_until_ready(td["observation_norm"])
    assert "absent_norm" not in td
    assert jnp.allclose(out2, ref, atol=1e-5, rtol=1e-5)

    # Case 3: bf16 obs, ragged batch, D a multiple of 128 -> non-divisible row
    # grid with masked edge block (no pad, no slice), f32 compute, bf16 store.
    Bb, Db = 50, 256
    xb = jax.random.normal(k_x2, (Bb, Db), dtype=jnp.float32).astype(jnp.bfloat16)
    locb = jnp.full((Db,), 0.25, jnp.float32)
    scaleb = jnp.full((Db,), 2.0, jnp.float32)
    outb = jax.block_until_ready(
        observation_norm(xb, locb, 1.0 / scaleb, min_pallas_elems=0))
    refb = ((xb.astype(jnp.float32) - locb) / scaleb).astype(jnp.bfloat16)
    assert outb.shape == xb.shape and outb.dtype == jnp.bfloat16
    assert jnp.allclose(outb.astype(jnp.float32), refb.astype(jnp.float32),
                        atol=2e-2, rtol=2e-2)

    # Case 4: D not a multiple of 128 AND B not a multiple of the fold factor
    # -> Pallas on the first (B//k)*k rows, tiny XLA epilogue for the tail.
    Bc, Dc = 37, 48
    xc = jax.random.normal(k_x3, (Bc, Dc), dtype=jnp.float32)
    outc = jax.block_until_ready(
        observation_norm(xc, loc, inv_scale, min_pallas_elems=0))
    refc = (xc - loc[None, :]) / scale[None, :]
    assert outc.shape == xc.shape
    assert jnp.allclose(outc, refc, atol=1e-5, rtol=1e-5)

    # Case 5: force a feature-axis split via a tiny block budget to exercise
    # the (W-outer, rows-inner) grid ordering with resident loc/scale tiles.
    Bd, Dd = 16, 512
    xd = jax.random.normal(k_x4, (Bd, Dd), dtype=jnp.float32)
    locd = jax.random.normal(k_loc, (Dd,), dtype=jnp.float32)
    scaled = jax.random.uniform(k_scale, (Dd,), dtype=jnp.float32,
                                minval=0.5, maxval=2.0)
    outd = jax.block_until_ready(
        observation_norm(xd, locd, 1.0 / scaled, min_pallas_elems=0,
                         block_bytes=8192, vmem_limit_bytes=32 * 1024 * 1024))
    refd = (xd - locd[None, :]) / scaled[None, :]
    assert jnp.allclose(outd, refd, atol=1e-5, rtol=1e-5)

    print("KERNEL_OK")
</pallas_src>

<mosaic_0001>
module attributes {stable_mosaic.version = 11 : i64} {
  func.func @_obs_norm_kernel(%arg0: i32, %arg1: i32, %arg2: memref<8x384xf32, #tpu.memory_space<vmem>>, %arg3: memref<1x384xf32, #tpu.memory_space<vmem>>, %arg4: memref<1x384xf32, #tpu.memory_space<vmem>>, %arg5: memref<8x384xf32, #tpu.memory_space<vmem>>) attributes {dimension_semantics = [#tpu.dimension_semantics<parallel>, #tpu.dimension_semantics<parallel>], iteration_bounds = array<i64: 1, 1>, scalar_prefetch = 0 : i64, scratch_operands = 0 : i64, tpu.core_type = #tpu.core_type<tc>, window_params = [{transform_indices = @transform_0, window_bounds = array<i64: 8, 384>}, {transform_indices = @transform_1, window_bounds = array<i64: 1, 384>}, {transform_indices = @transform_2, window_bounds = array<i64: 1, 384>}, {transform_indices = @transform_3, window_bounds = array<i64: 8, 384>}]} {
    %c0 = arith.constant 0 : index
    %c0_0 = arith.constant 0 : index
    %0 = vector.load %arg2[%c0, %c0_0] : memref<8x384xf32, #tpu.memory_space<vmem>>, vector<8x384xf32>
    %c0_1 = arith.constant 0 : index
    %c0_2 = arith.constant 0 : index
    %1 = vector.load %arg3[%c0_1, %c0_2] : memref<1x384xf32, #tpu.memory_space<vmem>>, vector<1x384xf32>
    %2 = vector.broadcast %1 : vector<1x384xf32> to vector<8x384xf32>
    %3 = arith.subf %0, %2 : vector<8x384xf32>
    %c0_3 = arith.constant 0 : index
    %c0_4 = arith.constant 0 : index
    %4 = vector.load %arg4[%c0_3, %c0_4] : memref<1x384xf32, #tpu.memory_space<vmem>>, vector<1x384xf32>
    %5 = vector.broadcast %4 : vector<1x384xf32> to vector<8x384xf32>
    %6 = arith.mulf %3, %5 : vector<8x384xf32>
    %c0_5 = arith.constant 0 : index
    %c0_6 = arith.constant 0 : index
    %7 = vector.load %arg5[%c0_5, %c0_6] : memref<8x384xf32, #tpu.memory_space<vmem>>, vector<8x384xf32>
    tpu.vector_store %arg5[%c0_5, %c0_6], %6 {strides = array<i32>} : memref<8x384xf32, #tpu.memory_space<vmem>>, vector<8x384xf32>,
    return
  }
  func.func @transform_0(%arg0: i32, %arg1: i32) -> (i32, i32) {
    %c0_i32 = arith.constant 0 : i32
    return %arg1, %arg0 : i32, i32
  }
  func.func @transform_1(%arg0: i32, %arg1: i32) -> (i32, i32) {
    %c0_i32 = arith.constant 0 : i32
    %c0_i32_0 = arith.constant 0 : i32
    return %c0_i32, %arg0 : i32, i32
  }
  func.func @transform_2(%arg0: i32, %arg1: i32) -> (i32, i32) {
    %c0_i32 = arith.constant 0 : i32
    %c0_i32_0 = arith.constant 0 : i32
    return %c0_i32, %arg0 : i32, i32
  }
  func.func @transform_3(%arg0: i32, %arg1: i32) -> (i32, i32) {
    %c0_i32 = arith.constant 0 : i32
    return %arg1, %arg0 : i32, i32
  }
}

</mosaic_0001>

<bundles_post_ra>
// kernel: tpu_custom_call.1
= control target key start
LH: loop header
LB: loop body
LE: loop exit
PB: predicated region body
PF: predicated region fallthrough
CT: control target
= control target key end

     0   :  { %8 = vsyncpa [#allocation3], 0  ;;  %s190_s0 = inlined_call_operand.hbm [shape: f32[8,384], index: 0, kind: input, shape index: {}]   ;;  %s191_s1 = inlined_call_operand.vmem [shape: f32[1,384], index: 1, kind: input, shape index: {}]   ;;  %s192_s2 = inlined_call_operand.vmem [shape: f32[1,384], index: 2, kind: input, shape index: {}]   ;;  %s193_s3 = inlined_call_operand.hbm [shape: f32[8,384], index: 3, kind: output, shape index: {}]  }
   0x1   :  { %9 = vsyncpa [#allocation4], 0  ;;  %s138_s12 = smov [#allocation2]   ;;  %s90_s16 = scalar_lea.hbm %s190_s0, 384 }
   0x2   :  { %s16_s13 = sshll.u32 %s138_s12, 4  ;;  %p91_p0 = scmp.ne.s32.totalorder %s190_s0, %s90_s16  ;;  %s17_s13 = int_to_ptr.vmem [resolvable:$true] %s16_s13 }
   0x3   :  { %p94_p1 = scmp.lt.u32.totalorder %s90_s16, %s190_s0 }
   0x5   :  { %p96_p2 = pnand %p94_p1, %p91_p0 }
   0x7   :  { %99 = shalt.err (!%p96_p2)
}
   0x8   :  { %s100_s21 = scalar_lea.vmem %s17_s13, 384  ;;  %p105_p4 = scmp.lt.s32.totalorder %s17_s13, %s17_s13 }
   0x9   :  { %p101_p3 = scmp.ne.s32.totalorder %s17_s13, %s100_s21  ;;  %p106_p5 = scmp.lt.s32.totalorder %s100_s21, %s100_s21 }
   0xb   :  { %p107_p6 = por %p106_p5, %p105_p4 }
   0xd   :  { %p108_p7 = pnand %p107_p6, %p101_p3 }
   0xf   :  { %111 = shalt.err (!%p108_p7)
}
  0x10   :  { %19 = dma.hbm_to_vmem [thread:$0]  %s190_s0, 384, %s17_s13, [#allocation3]  }
  0x11   :  { %134 = dma.done.wait [#allocation3], 384  }
  0x12   :  { %135 = vsyncadd [#allocation3], 4294966912  ;;  %v32_v0 = vlaneseq  ;;  %v27_v5 = vld [vmem:[#allocation2] sm:$0xff]  ;;  %v28_v10 = vld [vmem:[#allocation2 + $0x8] sm:$0xff]  ;;  %s139_s0 = smov [#allocation5]  }
  0x13   :  { %v30_v6 = vld [vmem:[%s191_s1] sm:$0x7]  ;;  %v29_v13 = vld [vmem:[#allocation2 + $0x10] sm:$0xff]  ;;  %s79_s28 = sshll.u32 %s139_s0, 4  ;;  %s80_s28 = int_to_ptr.vmem [resolvable:$true] %s79_s28 }
  0x14   :  { %v33_v1 = vshrl.u32 %v32_v0, 7  ;;  %v50_v7 = vld [vmem:[%s192_s2] sm:$0x7]  ;;  %s112_s1 = scalar_lea.vmem %s80_s28, 384  ;;  %p117_p9 = scmp.lt.s32.totalorder %s80_s28, %s80_s28 }
  0x15   :  { %p113_p8 = scmp.ne.s32.totalorder %s80_s28, %s112_s1  ;;  %p118_p10 = scmp.lt.s32.totalorder %s112_s1, %s112_s1 }
  0x16   :  { %v34_v2 = vsub.s32 0, %v33_v1  ;;  %v38_v3 = vsub.s32 1, %v33_v1  ;;  %v42_v4 = vsub.s32 2, %v33_v1 }
  0x17   :  { %p119_p11 = por %p118_p10, %p117_p9 }
  0x18   :  { %v35_v8 = vrot.slane %v30_v6, %v34_v2  ;;  %v55_v9 = vrot.slane %v50_v7, %v34_v2  ;;  %v39_v11 = vrot.slane %v30_v6, %v38_v3  ;;  %v59_v12 = vrot.slane %v50_v7, %v38_v3 }
  0x19   :  { %v43_v14 = vrot.slane %v30_v6, %v42_v4  ;;  %v63_v15 = vrot.slane %v50_v7, %v42_v4  ;;  %p120_p12 = pnand %p119_p11, %p113_p8 }
  0x1a   :  { %v47_v16 = vsub.f32 %v27_v5, %v35_v8  ;;  %v48_v17 = vsub.f32 %v28_v10, %v39_v11 }
  0x1b   :  { %v49_v18 = vsub.f32 %v29_v13, %v43_v14 }
  0x1c   :  { %v67_v19 = vmul.f32 %v55_v9, %v47_v16  ;;  %v68_v20 = vmul.f32 %v59_v12, %v48_v17 }
  0x1d   :  { %v69_v21 = vmul.f32 %v63_v15, %v49_v18 }
  0x1e   :  { %70 = vst [vmem:[#allocation5] sm:$0xff] %v67_v19  ;;  %71 = vst [vmem:[#allocation5 + $0x8] sm:$0xff] %v68_v20 }
  0x1f   :  { %72 = vst [vmem:[#allocation5 + $0x10] sm:$0xff] %v69_v21 }
  0x20   :  { %123 = shalt.err (!%p120_p12)
}
  0x21   :  { %s124_s30 = scalar_lea.hbm %s193_s3, 384 }
  0x22   :  { %p125_p13 = scmp.ne.s32.totalorder %s193_s3, %s124_s30  ;;  %p128_p0 = scmp.lt.u32.totalorder %s124_s30, %s193_s3 }
  0x24   :  { %p130_p1 = pnand %p128_p0, %p125_p13 }
  0x26   :  { %133 = shalt.err (!%p130_p1)
}
  0x27   :  { %82 = dma.vmem_to_hbm [thread:$0]  %s80_s28, 384, %s193_s3, [#allocation4]  }
  0x28   :  { %136 = dma.done.wait [#allocation4], 384  }
  0x29   :  { %137 = vsyncadd [#allocation4], 4294966912 }
  0x2a   :  { %86 = vsyncpa [#allocation3], 1 }
  0x2b   :  { %87 = vsyncpa [#allocation4], 1 }

</bundles_post_ra>
